<compile_context>
chip_gen: v6e
topology: v6e:2x2x1
jax: 0.10.0
libtpu: 0.0.40
codegen_flags: <defaults>
</compile_context>

<pallas_src>
import numpy as np
import jax
import jax.numpy as jnp
from jax.experimental import pallas as pl
from jax.experimental.pallas import tpu as pltpu


# -----------------------------------------------------------------------------
# Mask construction (pure numpy glue -- mirrors MADE.update_masks exactly)
# -----------------------------------------------------------------------------
def made_masks(nin, hidden_sizes, nout, natural_ordering=False, seed=0):
    L = len(hidden_sizes)
    rng = np.random.RandomState(seed)
    m = {}
    m[-1] = np.arange(nin) if natural_ordering else rng.permutation(nin)
    for l in range(L):
        m[l] = rng.randint(m[l - 1].min(), nin - 1, size=hidden_sizes[l])
    masks = [m[l - 1][:, None] <= m[l][None, :] for l in range(L)]
    masks.append(m[L - 1][:, None] < m[-1][None, :])
    if nout > nin:
        k = int(nout / nin)
        masks[-1] = np.concatenate([masks[-1]] * k, axis=1)
    # masks[i] has shape (in_features_i, out_features_i) -- the layout consumed
    # by h @ (mask * W).
    return masks


def _round_up(x, m):
    return (x + m - 1) // m * m


def _vmem_capacity_bytes():
    try:
        info = pltpu.get_tpu_info()
        cap = getattr(info, "vmem_capacity_bytes", None)
        if cap:
            return int(cap)
    except Exception:
        pass
    return 64 << 20  # conservative default (v7x per-TC)


# -----------------------------------------------------------------------------
# Pallas kernel: fused masked-MLP (weights pre-masked + bf16, batch-tiled grid)
# -----------------------------------------------------------------------------
def build_made_kernel(num_layers):
    def kernel(*refs):
        # refs = (x_tile, w0, b0, w1, b1, ..., wK, bK, out_tile)
        x_ref = refs[0]
        o_ref = refs[-1]
        h = x_ref[...]                                  # f32 activations
        for l in range(num_layers):
            w_ref = refs[1 + 2 * l]                     # bf16, mask pre-folded
            b_ref = refs[2 + 2 * l]                     # f32
            h = jnp.dot(h.astype(jnp.bfloat16), w_ref[...],
                        preferred_element_type=jnp.float32) + b_ref[...]
            if l != num_layers - 1:
                h = jnp.maximum(h, 0.0)                 # ReLU on all but last
        o_ref[...] = h.astype(o_ref.dtype)
    return kernel


def made_forward(x, weights_t, masks_t, biases, *, batch_tile=None):
    """x: [B, nin] f32; weights_t[i]: [in_i, out_i]; masks_t[i]: [in_i, out_i];
    biases[i]: [1, out_i].  Returns [B, nout] f32 (same semantics as the
    PyTorch MADE forward, with bf16 MXU operands / f32 accumulation)."""
    num_layers = len(weights_t)
    dims = [w.shape[0] for w in weights_t] + [weights_t[-1].shape[1]]
    nin, nout = dims[0], dims[-1]
    batch = x.shape[0]

    vmem_cap = _vmem_capacity_bytes()
    if batch_tile is None:
        # Bigger M tile on 128 MiB parts (v5e/v6e); 256-aligned tile on 64 MiB v7x.
        batch_tile = 512 if vmem_cap >= (100 << 20) else 256

    # 1) Fold static masks into weights, cast to bf16 (done once, outside kernel).
    masked_w = [(w * m).astype(jnp.bfloat16) for w, m in zip(weights_t, masks_t)]

    # 2) Pad feature dims: nin only to a multiple of 8 (sublane); hidden/nout to
    #    128 (lane).  Zero padding + zero bias keeps padded lanes exactly 0
    #    through ReLU and later layers, so results are unchanged.
    pdims = [_round_up(dims[0], 8)] + [_round_up(d, 128) for d in dims[1:]]
    w_p, b_p = [], []
    for l in range(num_layers):
        pin, pout = pdims[l], pdims[l + 1]
        w = masked_w[l]
        b = biases[l]
        w_pad = jnp.zeros((pin, pout), jnp.bfloat16).at[: w.shape[0], : w.shape[1]].set(w)
        b_pad = jnp.zeros((1, pout), jnp.float32).at[:, : b.shape[1]].set(
            b.astype(jnp.float32))
        w_p.append(w_pad)
        b_p.append(b_pad)

    # 3) Batch tiling: tb a multiple of 8, capped at batch_tile, and the grid is
    #    forced to >= 2 steps so streamed x/out DMAs pipeline behind compute.
    tb = max(8, min(batch_tile, _round_up(max(batch // 2, 1), 8)))
    pb = max(_round_up(batch, tb), 2 * tb)
    x_pad = jnp.zeros((pb, pdims[0]), jnp.float32).at[:batch, :nin].set(x)
    grid = (pb // tb,)

    args = [x_pad]
    for w, b in zip(w_p, b_p):
        args.extend([w, b])

    kernel = build_made_kernel(num_layers)

    def build_call(single_buffer_weights):
        # x / out streamed per grid step (default double-buffer); weights/biases
        # full-shape constant-index blocks, single-buffered when supported.
        in_specs = [pl.BlockSpec((tb, pdims[0]), lambda i: (i, 0))]
        for w, b in zip(w_p, b_p):
            if single_buffer_weights:
                in_specs.append(pl.BlockSpec(w.shape, lambda i: (0, 0),
                                             pipeline_mode=pl.Buffered(1)))
                in_specs.append(pl.BlockSpec(b.shape, lambda i: (0, 0),
                                             pipeline_mode=pl.Buffered(1)))
            else:
                in_specs.append(pl.BlockSpec(w.shape, lambda i: (0, 0)))
                in_specs.append(pl.BlockSpec(b.shape, lambda i: (0, 0)))
        out_spec = pl.BlockSpec((tb, pdims[-1]), lambda i: (i, 0))

        # VMEM budget: resident weights/biases (x1 or x2 buffers) + double-
        # buffered x/out tiles + activation intermediates, clamped to the chip.
        nbuf_w = 1 if single_buffer_weights else 2
        resident = nbuf_w * (sum(int(w.size) for w in w_p) * 2
                             + sum(int(b.size) for b in b_p) * 4)
        streamed = 2 * (tb * pdims[0] + tb * pdims[-1]) * 4
        activ = 2 * tb * max(pdims) * 4
        vmem_bytes = int(1.25 * (resident + streamed + activ)) + (4 << 20)
        vmem_bytes = max(8 << 20, min(vmem_bytes, int(0.85 * vmem_cap)))

        flops = 2 * pb * sum(pdims[l] * pdims[l + 1] for l in range(num_layers))
        bytes_accessed = (sum(int(w.size) for w in w_p) * 2
                          + sum(int(b.size) for b in b_p) * 4
                          + int(x_pad.size) * 4 + pb * pdims[-1] * 4)
        cost = pl.CostEstimate(flops=flops, transcendentals=0,
                               bytes_accessed=bytes_accessed)

        return pl.pallas_call(
            kernel,
            out_shape=jax.ShapeDtypeStruct((pb, pdims[-1]), jnp.float32),
            grid_spec=pltpu.PrefetchScalarGridSpec(
                num_scalar_prefetch=0,
                grid=grid,
                in_specs=in_specs,
                out_specs=out_spec,
            ),
            compiler_params=pltpu.CompilerParams(
                dimension_semantics=("parallel",),   # batch tiles -> both TCs on v7x
                vmem_limit_bytes=vmem_bytes,
            ),
            cost_estimate=cost,
        )

    try:
        out_padded = build_call(True)(*args)
    except Exception:
        # Fallback: default (double-buffered) weight blocks if Buffered(1) is
        # rejected by this jax/Mosaic version.
        out_padded = build_call(False)(*args)

    return out_padded[:batch, :nout]


# -----------------------------------------------------------------------------
# Reference (numpy, same bf16 rounding as the kernel) for correctness check
# -----------------------------------------------------------------------------
def made_forward_ref(x, weights_t, masks_t, biases):
    def bf16(a):
        return np.asarray(jnp.asarray(a, jnp.float32).astype(jnp.bfloat16)
                          .astype(jnp.float32))

    h = np.asarray(x, np.float32)
    n = len(weights_t)
    for i, (w, m, b) in enumerate(zip(weights_t, masks_t, biases)):
        wm = bf16(np.asarray(w, np.float32) * np.asarray(m, np.float32))
        h = bf16(h) @ wm + np.asarray(b, np.float32)
        if i != n - 1:
            h = np.maximum(h, 0.0)
    return h


if __name__ == "__main__":
    # Small MADE: nin=8, hidden=[32, 32], nout=16 (= 2 * nin), batch=4.
    nin, hidden_sizes, nout = 8, [32, 32], 16
    batch = 4

    hs = [nin] + hidden_sizes + [nout]
    layer_dims = list(zip(hs[:-1], hs[1:]))          # [(8,32), (32,32), (32,16)]
    np_masks = made_masks(nin, hidden_sizes, nout, natural_ordering=False, seed=0)

    # Deterministic parameter init (PyTorch-Linear-style uniform bounds).
    key = jax.random.PRNGKey(0)
    weights_t, masks_t, biases = [], [], []
    for (fan_in, fan_out), mk in zip(layer_dims, np_masks):
        key, kw, kb = jax.random.split(key, 3)
        bound = 1.0 / np.sqrt(fan_in)
        w_t = jax.random.uniform(kw, (fan_in, fan_out), jnp.float32, -bound, bound)
        b = jax.random.uniform(kb, (1, fan_out), jnp.float32, -bound, bound)
        weights_t.append(w_t)
        masks_t.append(jnp.asarray(mk, jnp.float32))
        biases.append(b)

    key, kx = jax.random.split(key)
    x = jax.random.normal(kx, (batch, nin), jnp.float32)

    out = made_forward(x, weights_t, masks_t, biases)
    out = jax.block_until_ready(out)

    ref = made_forward_ref(np.asarray(x), weights_t, masks_t, biases)
    np.testing.assert_allclose(np.asarray(out), ref, rtol=1e-3, atol=1e-3)

    print("KERNEL_OK")
</pallas_src>

<mosaic_0001>
module attributes {stable_mosaic.version = 11 : i64} {
  func.func @kernel(%arg0: i32, %arg1: memref<8x8xf32, #tpu.memory_space<vmem>>, %arg2: memref<8x128xbf16, #tpu.memory_space<vmem>>, %arg3: memref<1x128xf32, #tpu.memory_space<vmem>>, %arg4: memref<128x128xbf16, #tpu.memory_space<vmem>>, %arg5: memref<1x128xf32, #tpu.memory_space<vmem>>, %arg6: memref<128x128xbf16, #tpu.memory_space<vmem>>, %arg7: memref<1x128xf32, #tpu.memory_space<vmem>>, %arg8: memref<8x128xf32, #tpu.memory_space<vmem>>) attributes {dimension_semantics = [#tpu.dimension_semantics<parallel>], iteration_bounds = array<i64: 2>, scalar_prefetch = 0 : i64, scratch_operands = 0 : i64, tpu.core_type = #tpu.core_type<tc>, window_params = [{transform_indices = @transform_0, window_bounds = array<i64: 8, 8>}, {pipeline_mode = #tpu.pipeline_mode<synchronous>, transform_indices = @transform_1, window_bounds = array<i64: 8, 128>}, {pipeline_mode = #tpu.pipeline_mode<synchronous>, transform_indices = @transform_2, window_bounds = array<i64: 1, 128>}, {pipeline_mode = #tpu.pipeline_mode<synchronous>, transform_indices = @transform_3, window_bounds = array<i64: 128, 128>}, {pipeline_mode = #tpu.pipeline_mode<synchronous>, transform_indices = @transform_4, window_bounds = array<i64: 1, 128>}, {pipeline_mode = #tpu.pipeline_mode<synchronous>, transform_indices = @transform_5, window_bounds = array<i64: 128, 128>}, {pipeline_mode = #tpu.pipeline_mode<synchronous>, transform_indices = @transform_6, window_bounds = array<i64: 1, 128>}, {transform_indices = @transform_7, window_bounds = array<i64: 8, 128>}]} {
    %c0 = arith.constant 0 : index
    %c0_0 = arith.constant 0 : index
    %0 = vector.load %arg1[%c0, %c0_0] : memref<8x8xf32, #tpu.memory_space<vmem>>, vector<8x8xf32>
    %1 = arith.truncf %0 : vector<8x8xf32> to vector<8x8xbf16>
    %c0_1 = arith.constant 0 : index
    %c0_2 = arith.constant 0 : index
    %2 = vector.load %arg2[%c0_1, %c0_2] : memref<8x128xbf16, #tpu.memory_space<vmem>>, vector<8x128xbf16>
    %cst = arith.constant dense<0.000000e+00> : vector<8x128xf32>
    %3 = tpu.matmul %1, %2, %cst {dimension_numbers = #tpu.dot_dimension_numbers<[1], [0], [0], [1], [0, 0, 1, 1], [], []>} : vector<8x8xbf16>, vector<8x128xbf16>, vector<8x128xf32> -> vector<8x128xf32>
    %c0_3 = arith.constant 0 : index
    %c0_4 = arith.constant 0 : index
    %4 = vector.load %arg3[%c0_3, %c0_4] : memref<1x128xf32, #tpu.memory_space<vmem>>, vector<1x128xf32>
    %5 = vector.broadcast %4 : vector<1x128xf32> to vector<8x128xf32>
    %6 = arith.addf %3, %5 : vector<8x128xf32>
    %cst_5 = arith.constant 0.000000e+00 : f32
    %7 = vector.broadcast %cst_5 : f32 to vector<8x128xf32>
    %8 = arith.maximumf %6, %7 : vector<8x128xf32>
    %9 = arith.truncf %8 : vector<8x128xf32> to vector<8x128xbf16>
    %c0_6 = arith.constant 0 : index
    %c0_7 = arith.constant 0 : index
    %10 = vector.load %arg4[%c0_6, %c0_7] : memref<128x128xbf16, #tpu.memory_space<vmem>>, vector<128x128xbf16>
    %cst_8 = arith.constant dense<0.000000e+00> : vector<8x128xf32>
    %11 = tpu.matmul %9, %10, %cst_8 {dimension_numbers = #tpu.dot_dimension_numbers<[1], [0], [0], [1], [0, 0, 1, 1], [], []>} : vector<8x128xbf16>, vector<128x128xbf16>, vector<8x128xf32> -> vector<8x128xf32>
    %c0_9 = arith.constant 0 : index
    %c0_10 = arith.constant 0 : index
    %12 = vector.load %arg5[%c0_9, %c0_10] : memref<1x128xf32, #tpu.memory_space<vmem>>, vector<1x128xf32>
    %13 = vector.broadcast %12 : vector<1x128xf32> to vector<8x128xf32>
    %14 = arith.addf %11, %13 : vector<8x128xf32>
    %cst_11 = arith.constant 0.000000e+00 : f32
    %15 = vector.broadcast %cst_11 : f32 to vector<8x128xf32>
    %16 = arith.maximumf %14, %15 : vector<8x128xf32>
    %17 = arith.truncf %16 : vector<8x128xf32> to vector<8x128xbf16>
    %c0_12 = arith.constant 0 : index
    %c0_13 = arith.constant 0 : index
    %18 = vector.load %arg6[%c0_12, %c0_13] : memref<128x128xbf16, #tpu.memory_space<vmem>>, vector<128x128xbf16>
    %cst_14 = arith.constant dense<0.000000e+00> : vector<8x128xf32>
    %19 = tpu.matmul %17, %18, %cst_14 {dimension_numbers = #tpu.dot_dimension_numbers<[1], [0], [0], [1], [0, 0, 1, 1], [], []>} : vector<8x128xbf16>, vector<128x128xbf16>, vector<8x128xf32> -> vector<8x128xf32>
    %c0_15 = arith.constant 0 : index
    %c0_16 = arith.constant 0 : index
    %20 = vector.load %arg7[%c0_15, %c0_16] : memref<1x128xf32, #tpu.memory_space<vmem>>, vector<1x128xf32>
    %21 = vector.broadcast %20 : vector<1x128xf32> to vector<8x128xf32>
    %22 = arith.addf %19, %21 : vector<8x128xf32>
    %c0_17 = arith.constant 0 : index
    %c0_18 = arith.constant 0 : index
    %23 = vector.load %arg8[%c0_17, %c0_18] : memref<8x128xf32, #tpu.memory_space<vmem>>, vector<8x128xf32>
    tpu.vector_store %arg8[%c0_17, %c0_18], %22 {strides = array<i32>} : memref<8x128xf32, #tpu.memory_space<vmem>>, vector<8x128xf32>,
    return
  }
  func.func @transform_0(%arg0: i32) -> (i32, i32) {
    %c0_i32 = arith.constant 0 : i32
    %c0_i32_0 = arith.constant 0 : i32
    return %arg0, %c0_i32 : i32, i32
  }
  func.func @transform_1(%arg0: i32) -> (i32, i32) {
    %c0_i32 = arith.constant 0 : i32
    %c0_i32_0 = arith.constant 0 : i32
    %c0_i32_1 = arith.constant 0 : i32
    return %c0_i32, %c0_i32_0 : i32, i32
  }
  func.func @transform_2(%arg0: i32) -> (i32, i32) {
    %c0_i32 = arith.constant 0 : i32
    %c0_i32_0 = arith.constant 0 : i32
    %c0_i32_1 = arith.constant 0 : i32
    return %c0_i32, %c0_i32_0 : i32, i32
  }
  func.func @transform_3(%arg0: i32) -> (i32, i32) {
    %c0_i32 = arith.constant 0 : i32
    %c0_i32_0 = arith.constant 0 : i32
    %c0_i32_1 = arith.constant 0 : i32
    return %c0_i32, %c0_i32_0 : i32, i32
  }
  func.func @transform_4(%arg0: i32) -> (i32, i32) {
    %c0_i32 = arith.constant 0 : i32
    %c0_i32_0 = arith.constant 0 : i32
    %c0_i32_1 = arith.constant 0 : i32
    return %c0_i32, %c0_i32_0 : i32, i32
  }
  func.func @transform_5(%arg0: i32) -> (i32, i32) {
    %c0_i32 = arith.constant 0 : i32
    %c0_i32_0 = arith.constant 0 : i32
    %c0_i32_1 = arith.constant 0 : i32
    return %c0_i32, %c0_i32_0 : i32, i32
  }
  func.func @transform_6(%arg0: i32) -> (i32, i32) {
    %c0_i32 = arith.constant 0 : i32
    %c0_i32_0 = arith.constant 0 : i32
    %c0_i32_1 = arith.constant 0 : i32
    return %c0_i32, %c0_i32_0 : i32, i32
  }
  func.func @transform_7(%arg0: i32) -> (i32, i32) {
    %c0_i32 = arith.constant 0 : i32
    %c0_i32_0 = arith.constant 0 : i32
    return %arg0, %c0_i32 : i32, i32
  }
}

module attributes {stable_mosaic.version = 11 : i64} {
  func.func @kernel(%arg0: i32, %arg1: memref<8x8xf32, #tpu.memory_space<vmem>>, %arg2: memref<8x128xbf16, #tpu.memory_space<vmem>>, %arg3: memref<1x128xf32, #tpu.memory_space<vmem>>, %arg4: memref<128x128xbf16, #tpu.memory_space<vmem>>, %arg5: memref<1x128xf32, #tpu.memory_space<vmem>>, %arg6: memref<128x128xbf16, #tpu.memory_space<vmem>>, %arg7: memref<1x128xf32, #tpu.memory_space<vmem>>, %arg8: memref<8x128xf32, #tpu.memory_space<vmem>>) attributes {dimension_semantics = [#tpu.dimension_semantics<parallel>], iteration_bounds = array<i64: 2>, scalar_prefetch = 0 : i64, scratch_operands = 0 : i64, tpu.core_type = #tpu.core_type<tc>, window_params = [{transform_indices = @transform_0, window_bounds = array<i64: 8, 8>}, {pipeline_mode = #tpu.pipeline_mode<synchronous>, transform_indices = @transform_1, window_bounds = array<i64: 8, 128>}, {pipeline_mode = #tpu.pipeline_mode<synchronous>, transform_indices = @transform_2, window_bounds = array<i64: 1, 128>}, {pipeline_mode = #tpu.pipeline_mode<synchronous>, transform_indices = @transform_3, window_bounds = array<i64: 128, 128>}, {pipeline_mode = #tpu.pipeline_mode<synchronous>, transform_indices = @transform_4, window_bounds = array<i64: 1, 128>}, {pipeline_mode = #tpu.pipeline_mode<synchronous>, transform_indices = @transform_5, window_bounds = array<i64: 128, 128>}, {pipeline_mode = #tpu.pipeline_mode<synchronous>, transform_indices = @transform_6, window_bounds = array<i64: 1, 128>}, {transform_indices = @transform_7, window_bounds = array<i64: 8, 128>}]} {
    %c0 = arith.constant 0 : index
    %c0_0 = arith.constant 0 : index
    %0 = vector.load %arg1[%c0, %c0_0] : memref<8x8xf32, #tpu.memory_space<vmem>>, vector<8x8xf32>
    %1 = arith.truncf %0 : vector<8x8xf32> to vector<8x8xbf16>
    %c0_1 = arith.constant 0 : index
    %c0_2 = arith.constant 0 : index
    %2 = vector.load %arg2[%c0_1, %c0_2] : memref<8x128xbf16, #tpu.memory_space<vmem>>, vector<8x128xbf16>
    %cst = arith.constant dense<0.000000e+00> : vector<8x128xf32>
    %3 = tpu.matmul %1, %2, %cst {dimension_numbers = #tpu.dot_dimension_numbers<[1], [0], [0], [1], [0, 0, 1, 1], [], []>} : vector<8x8xbf16>, vector<8x128xbf16>, vector<8x128xf32> -> vector<8x128xf32>
    %c0_3 = arith.constant 0 : index
    %c0_4 = arith.constant 0 : index
    %4 = vector.load %arg3[%c0_3, %c0_4] : memref<1x128xf32, #tpu.memory_space<vmem>>, vector<1x128xf32>
    %5 = vector.broadcast %4 : vector<1x128xf32> to vector<8x128xf32>
    %6 = arith.addf %3, %5 : vector<8x128xf32>
    %cst_5 = arith.constant 0.000000e+00 : f32
    %7 = vector.broadcast %cst_5 : f32 to vector<8x128xf32>
    %8 = arith.maximumf %6, %7 : vector<8x128xf32>
    %9 = arith.truncf %8 : vector<8x128xf32> to vector<8x128xbf16>
    %c0_6 = arith.constant 0 : index
    %c0_7 = arith.constant 0 : index
    %10 = vector.load %arg4[%c0_6, %c0_7] : memref<128x128xbf16, #tpu.memory_space<vmem>>, vector<128x128xbf16>
    %cst_8 = arith.constant dense<0.000000e+00> : vector<8x128xf32>
    %11 = tpu.matmul %9, %10, %cst_8 {dimension_numbers = #tpu.dot_dimension_numbers<[1], [0], [0], [1], [0, 0, 1, 1], [], []>} : vector<8x128xbf16>, vector<128x128xbf16>, vector<8x128xf32> -> vector<8x128xf32>
    %c0_9 = arith.constant 0 : index
    %c0_10 = arith.constant 0 : index
    %12 = vector.load %arg5[%c0_9, %c0_10] : memref<1x128xf32, #tpu.memory_space<vmem>>, vector<1x128xf32>
    %13 = vector.broadcast %12 : vector<1x128xf32> to vector<8x128xf32>
    %14 = arith.addf %11, %13 : vector<8x128xf32>
    %cst_11 = arith.constant 0.000000e+00 : f32
    %15 = vector.broadcast %cst_11 : f32 to vector<8x128xf32>
    %16 = arith.maximumf %14, %15 : vector<8x128xf32>
    %17 = arith.truncf %16 : vector<8x128xf32> to vector<8x128xbf16>
    %c0_12 = arith.constant 0 : index
    %c0_13 = arith.constant 0 : index
    %18 = vector.load %arg6[%c0_12, %c0_13] : memref<128x128xbf16, #tpu.memory_space<vmem>>, vector<128x128xbf16>
    %cst_14 = arith.constant dense<0.000000e+00> : vector<8x128xf32>
    %19 = tpu.matmul %17, %18, %cst_14 {dimension_numbers = #tpu.dot_dimension_numbers<[1], [0], [0], [1], [0, 0, 1, 1], [], []>} : vector<8x128xbf16>, vector<128x128xbf16>, vector<8x128xf32> -> vector<8x128xf32>
    %c0_15 = arith.constant 0 : index
    %c0_16 = arith.constant 0 : index
    %20 = vector.load %arg7[%c0_15, %c0_16] : memref<1x128xf32, #tpu.memory_space<vmem>>, vector<1x128xf32>
    %21 = vector.broadcast %20 : vector<1x128xf32> to vector<8x128xf32>
    %22 = arith.addf %19, %21 : vector<8x128xf32>
    %c0_17 = arith.constant 0 : index
    %c0_18 = arith.constant 0 : index
    %23 = vector.load %arg8[%c0_17, %c0_18] : memref<8x128xf32, #tpu.memory_space<vmem>>, vector<8x128xf32>
    tpu.vector_store %arg8[%c0_17, %c0_18], %22 {strides = array<i32>} : memref<8x128xf32, #tpu.memory_space<vmem>>, vector<8x128xf32>,
    return
  }
  func.func @transform_0(%arg0: i32) -> (i32, i32) {
    %c0_i32 = arith.constant 0 : i32
    %c0_i32_0 = arith.constant 0 : i32
    return %arg0, %c0_i32 : i32, i32
  }
  func.func @transform_1(%arg0: i32) -> (i32, i32) {
    %c0_i32 = arith.constant 0 : i32
    %c0_i32_0 = arith.constant 0 : i32
    %c0_i32_1 = arith.constant 0 : i32
    return %c0_i32, %c0_i32_0 : i32, i32
  }
  func.func @transform_2(%arg0: i32) -> (i32, i32) {
    %c0_i32 = arith.constant 0 : i32
    %c0_i32_0 = arith.constant 0 : i32
    %c0_i32_1 = arith.constant 0 : i32
    return %c0_i32, %c0_i32_0 : i32, i32
  }
  func.func @transform_3(%arg0: i32) -> (i32, i32) {
    %c0_i32 = arith.constant 0 : i32
    %c0_i32_0 = arith.constant 0 : i32
    %c0_i32_1 = arith.constant 0 : i32
    return %c0_i32, %c0_i32_0 : i32, i32
  }
  func.func @transform_4(%arg0: i32) -> (i32, i32) {
    %c0_i32 = arith.constant 0 : i32
    %c0_i32_0 = arith.constant 0 : i32
    %c0_i32_1 = arith.constant 0 : i32
    return %c0_i32, %c0_i32_0 : i32, i32
  }
  func.func @transform_5(%arg0: i32) -> (i32, i32) {
    %c0_i32 = arith.constant 0 : i32
    %c0_i32_0 = arith.constant 0 : i32
    %c0_i32_1 = arith.constant 0 : i32
    return %c0_i32, %c0_i32_0 : i32, i32
  }
  func.func @transform_6(%arg0: i32) -> (i32, i32) {
    %c0_i32 = arith.constant 0 : i32
    %c0_i32_0 = arith.constant 0 : i32
    %c0_i32_1 = arith.constant 0 : i32
    return %c0_i32, %c0_i32_0 : i32, i32
  }
  func.func @transform_7(%arg0: i32) -> (i32, i32) {
    %c0_i32 = arith.constant 0 : i32
    %c0_i32_0 = arith.constant 0 : i32
    return %arg0, %c0_i32 : i32, i32
  }
}

</mosaic_0001>

<bundles_post_ra>
// kernel: tpu_custom_call.1
= control target key start
LH: loop header
LB: loop body
LE: loop exit
PB: predicated region body
PF: predicated region fallthrough
CT: control target
= control target key end

     0   :  { %12 = vsyncpa [#allocation3], 0  ;;  %s1209_s0 = inlined_call_operand.vmem [shape: f32[16,8], index: 0, kind: input, shape index: {}]   ;;  %s1210_s1 = inlined_call_operand.vmem [shape: bf16[8,128], index: 1, kind: input, shape index: {}]   ;;  %s1211_s2 = inlined_call_operand.vmem [shape: f32[1,128], index: 2, kind: input, shape index: {}]   ;;  %s1212_s3 = inlined_call_operand.hbm [shape: bf16[128,128], index: 3, kind: input, shape index: {}]   ;;  %s1213_s4 = inlined_call_operand.vmem [shape: f32[1,128], index: 4, kind: input, shape index: {}]   ;;  %s1214_s5 = inlined_call_operand.hbm [shape: bf16[128,128], index: 5, kind: input, shape index: {}]   ;;  %s1215_s6 = inlined_call_operand.vmem [shape: f32[1,128], index: 6, kind: input, shape index: {}]   ;;  %s1216_s7 = inlined_call_operand.hbm [shape: f32[16,128], index: 7, kind: output, shape index: {}]  }
   0x1   :  { %13 = vsyncpa [#allocation6], 0 }
   0x2   :  { %14 = vsyncpa [#allocation4], 0 }
   0x3   :  { %16 = vsyncpa [#allocation4 + $0x1], 0  ;;  %s1034_s24 = smov 0   ;;  %s1036_s25 = smov 0  }
   0x4   :  { %s1038_s26 = smov 0   ;;  %s1040_s27 = smov 0  }
   0x5 LB: > { %s1055_s28 = sadd.s32 4294967295, %s985_s27   ;;  %s685_s29 = sadd.s32 4294967294, %s985_s27   ;;  %s985_s27 = sphi %s1040_s27, %s1230_s27   ;;  %s981_s26 = sphi %s1038_s26, %s1229_s26   ;;  %s977_s25 = sphi %s1036_s25, %s1228_s25   ;;  %s973_s24 = sphi %s1034_s24, %s1227_s24  }
   0x6   : > { %s1059_s30 = sadd.s32 1, %s985_s27   ;;  %s181_s8 = sadd.s32 1, %s981_s26 }
   0x7   : > { %s178_s9 = ssub.s32 %s985_s27, %s1059_s30  ;;  %p191_p0 = scmp.ne.s32.totalorder %s981_s26, %s977_s25 }
   0x8   : > { %p179_p1 = scmp.eq.s32.totalorder %s178_s9, 0  ;;  %p192_p2 = scmp.eq.s32.totalorder %s1055_s28, 1 }
   0x9   : > { %p197_p3 = scmp.ne.s32.totalorder %s977_s25, %s973_s24  ;;  %p198_p4 = scmp.eq.s32.totalorder %s685_s29, 1 }
   0xa   : > { %s1070_s10 = scalar_select %p179_p1, %s981_s26, %s181_s8  }
   0xb   : > { %p1072_p5 = por %p192_p2, %p191_p0  ;;  %p1076_p6 = por %p198_p4, %p197_p3 }
   0xc   : > { %p686_p7 = scmp.ge.s32.totalorder %s985_s27, 1  ;;  %p205_p8 = scmp.lt.s32.totalorder %s985_s27, 3 }
   0xd   : > { %s1219_s12 = scalar_select %p1076_p6, 1, 0 }
   0xe   : > { %p1217_p9 = scmp.eq.s32.totalorder %s1055_s28, 0  ;;  %p1083_p10 = pnand %p686_p7, %p205_p8 }
   0xf   : > { %s987_s14 = smov [#allocation2]   ;;  %s988_s17 = smov [#allocation5]  }
  0x10   : > { %s223_s15 = sshll.u32 %s987_s14, 4  ;;  %p795_p11 = pneg %p1083_p10  ;;  %s224_s15 = int_to_ptr.vmem [resolvable:$true] %s223_s15 }
  0x11   : > { %s239_s18 = sshll.u32 %s988_s17, 4  ;;  %s876_s19 = scalar_lea.vmem %s224_s15, 1024  ;;  %s240_s18 = int_to_ptr.vmem [resolvable:$true] %s239_s18 }
  0x12   : > { %p1091_p12 = pnand %p1217_p9, %p795_p11  ;;  %p877_p0 = scmp.ne.s32.totalorder %s224_s15, %s876_s19 }
  0x13   : > { %p884_p3 = scmp.lt.s32.totalorder %s224_s15, %s224_s15  ;;  %p885_p4 = scmp.lt.s32.totalorder %s876_s19, %s876_s19 }
  0x14   : > { %p867_p13 = pneg %p1091_p12 }
  0x15   : > { %p886_p7 = por %p885_p4, %p884_p3 }
  0x16   : > { %p879_p1 = pnand %p877_p0, %p867_p13 }
  0x18   : > { %p880_p2 = pneg %p879_p1 }
  0x1a   : > { %p887_p8 = pnand %p886_p7, %p880_p2 }
  0x1c   : > { %890 = shalt.err (!%p887_p8)
}
  0x1d   : > { %s989_s20 = smov 64   ;;  %s990_s21 = smov 4  }
  0x1e   : > { %798 = dma.hbm_to_vmem [thread:$0]  (!%p1091_p12), %s1212_s3, 1024, %s224_s15, [#allocation3], %s989_s20, %s989_s20, %s990_s21  }
  0x1f   : > { %s902_s29 = scalar_lea.vmem %s240_s18, 1024  ;;  %p910_p9 = scmp.lt.s32.totalorder %s240_s18, %s240_s18 }
  0x20   : > { %p903_p11 = scmp.ne.s32.totalorder %s240_s18, %s902_s29  ;;  %p911_p6 = scmp.lt.s32.totalorder %s902_s29, %s902_s29 }
  0x22   : > { %p905_p0 = pnand %p903_p11, %p867_p13  ;;  %p912_p3 = por %p911_p6, %p910_p9 }
  0x24   : > { %p906_p1 = pneg %p905_p0 }
  0x26   : > { %p913_p2 = pnand %p912_p3, %p906_p1 }
  0x28   : > { %916 = shalt.err (!%p913_p2)
}
  0x29   : > { %801 = dma.hbm_to_vmem [thread:$0]  (!%p1091_p12), %s1214_s5, 1024, %s240_s18, [#allocation6], %s989_s20, %s989_s20, %s990_s21  }
  0x2a   : > { %265 = sbr.rel (%p1083_p10) target bundleno = 667 (0x29b), region = 48  ;;  %p1222_p4 = scmp.eq.s32.totalorder (!%p1083_p10), %s1055_s28, 0 }
  0x2f   : > { %960 = dma.done.wait (%p1222_p4), [#allocation3], 1024   ;;  %p1223_p13 = pmov %p1222_p4 }
  0x30   : > { %p1224_p7 = pmov %p1222_p4 }
  0x31   : > { %962 = vsyncadd (%p1223_p13), [#allocation3], 4294966272 }
  0x32   : > { %964 = dma.done.wait (%p1224_p7), [#allocation6], 1024   ;;  %p1225_p6 = pmov %p1222_p4 }
  0x33   : > { %p300_p9 = scmp.lt.s32.totalorder %s1055_s28, 1  ;;  %v991_v0 = vmov 0.0   ;;  %vm992_vm0 = vmmov 0   ;;  %vm319_vm1 = vcmask 1043456   ;;  %v307_v1 = vld [vmem:[%s1210_s1] sm:$0xf] }
  0x34   : > { %966 = vsyncadd (%p1225_p6), [#allocation6], 4294966272  ;;  %739 = vmatprep.subr.bf16.mxu0 %v991_v0  ;;  %741 = vmatprep.mubr.msk.bf16.mxu0 %vm992_vm0, %v991_v0  ;;  %v321_v3 = vsel %vm319_vm1, %v307_v1, 0  ;;  %v849_v5 = vld [vmem:[#allocation2 + $0x38] sm:$0xff]   ;;  %vm315_vm2 = vcmask 64512   ;;  %v850_v6 = vld [vmem:[#allocation2 + $0x30] sm:$0xff]  }
  0x35   : > { %s301_s13 = scalar_select %p300_p9, %s1055_s28, 1  ;;  %745 = vmatprep.subr.bf16.mxu1 %v991_v0  ;;  %761 = vmatprep.mubr.msk.bf16.mxu1 %vm992_vm0, %v991_v0  ;;  %v851_v7 = vld [vmem:[#allocation2 + $0x28] sm:$0xff]   ;;  %v852_v8 = vld [vmem:[#allocation2 + $0x20] sm:$0xff]   ;;  %v853_v9 = vld [vmem:[#allocation2 + $0x18] sm:$0xff]  }
  0x36   : > { %740 = vmatpush3.bf16.msra.mxu0 %v321_v3  ;;  %746 = vmatpush3.bf16.msra.mxu1 %v849_v5  ;;  %v854_v10 = vld [vmem:[#allocation2 + $0x10] sm:$0xff]   ;;  %v855_v11 = vld [vmem:[#allocation2 + $0x8] sm:$0xff]   ;;  %v856_v12 = vld [vmem:[#allocation2] sm:$0xff]   ;;  %s297_s29 = sand.u32 1, %s977_s25  }
  0x37   : > { %s694_s14 = sshll.u32 %s301_s13, 3  ;;  %765 = vmatprep.subr.bf16.mxu0 %v991_v0  ;;  %747 = vmatprep.subr.bf16.mxu1 %v991_v0  ;;  %v857_v13 = vld [vmem:[#allocation5 + $0x38] sm:$0xff]   ;;  %v858_v14 = vld [vmem:[#allocation5 + $0x30] sm:$0xff]   ;;  %v859_v15 = vld [vmem:[#allocation5 + $0x28] sm:$0xff]   ;;  %s693_s8 = sshll.u32 %s297_s29, 3 }
  0x38   : > { %s303_s17 = scalar_lea.vmem %s1209_s0, %s694_s14  ;;  %v860_v16 = vld [vmem:[#allocation5 + $0x20] sm:$0xff]   ;;  %v861_v17 = vld [vmem:[#allocation5 + $0x18] sm:$0xff]   ;;  %v862_v18 = vld [vmem:[#allocation5 + $0x10] sm:$0xff]   ;;  %s716_s14 = sshll.u32 %s1055_s28, 7 }
  0x39   : > { %v305_v2 = vld [vmem:[%s303_s17] sm:$0xff]  ;;  %v863_v27 = vld [vmem:[#allocation5 + $0x8] sm:$0xff]   ;;  %s299_s15 = scalar_lea.vmem [#allocation7], %s693_s8  ;;  %s1168_s19 = scalar_lea.hbm %s1216_s7, %s716_s14 }
  0x3a   : > { %v306_v4 = vpack.c.bf16 %v305_v2, %v305_v2  ;;  %748 = vmatpush3.bf16.msra.mxu1 %v850_v6  ;;  %v695_v19 = vld [vmem:[%s1211_s2] ss:$0 sm:$0xff]  ;;  %s604_s16 = sshll.u32 %s299_s15, 4  ;;  %s591_s20 = scalar_lea.sflag [#allocation4], %s297_s29  ;;  %s1170_s16 = int_to_ptr.vmem [resolvable:$true] %s604_s16 }
  0x3b   : > { %749 = vmatprep.subr.bf16.mxu1 %v991_v0  ;;  %v864_v28 = vld [vmem:[#allocation5] sm:$0xff]   ;;  %s917_s21 = scalar_lea.vmem %s1170_s16, 128  ;;  %s993_s28 = smov [#allocation7]  }
  0x3c   : > { %742 = vmatmul.mubr.msk.bf16.vlgmr.msra.gmra.mxu0 %vm315_vm2, %v306_v4  ;;  %v697_v29 = vld [vmem:[%s1213_s4] ss:$0 sm:$0xff]  ;;  %p918_p10 = scmp.ne.s32.totalorder %s1170_s16, %s917_s21  ;;  %s921_s22 = sshll.u32 %s993_s28, 4  ;;  %s922_s22 = int_to_ptr.vmem [resolvable:$false] %s921_s22 }
  0x3d   : > { %781 = vmatprep.mubr.msk.bf16.mxu0 %vm992_vm0, %v991_v0  ;;  %766 = vmatpush3.bf16.msra.mxu0 %v857_v13  ;;  %v706_v37 = vld [vmem:[%s1215_s6] ss:$0 sm:$0xff]  ;;  %s923_s23 = scalar_lea.vmem %s922_s22, 256  ;;  %p924_p11 = scmp.lt.s32.totalorder %s1170_s16, %s922_s22 }
  0x3e   : > { %750 = vmatpush3.bf16.msra.mxu1 %v851_v7  ;;  %767 = vmatprep.subr.bf16.mxu0 %v991_v0  ;;  %p919_p12 = pnand %p918_p10, %p1072_p5  ;;  %p925_p0 = scmp.lt.s32.totalorder %s923_s23, %s917_s21 }
  0x3f   : > { %751 = vmatprep.subr.bf16.mxu1 %v991_v0 }
  0x40   : > { %p920_p8 = pneg %p919_p12  ;;  %p926_p1 = por %p925_p0, %p924_p11 }
  0x41   : > { %768 = vmatpush3.bf16.msra.mxu0 %v858_v14 }
  0x42   : > { %752 = vmatpush3.bf16.msra.mxu1 %v852_v8  ;;  %769 = vmatprep.subr.bf16.mxu0 %v991_v0  ;;  %p927_p3 = pnand %p926_p1, %p920_p8 }
  0x43   : > { %753 = vmatprep.subr.bf16.mxu1 %v991_v0 }
  0x45   : > { %770 = vmatpush3.bf16.msra.mxu0 %v859_v15 }
  0x46   : > { %754 = vmatpush3.bf16.msra.mxu1 %v853_v9  ;;  %771 = vmatprep.subr.bf16.mxu0 %v991_v0 }
  0x47   : > { %755 = vmatprep.subr.bf16.mxu1 %v991_v0 }
  0x49   : > { %772 = vmatpush3.bf16.msra.mxu0 %v860_v16 }
  0x4a   : > { %756 = vmatpush3.bf16.msra.mxu1 %v854_v10  ;;  %773 = vmatprep.subr.bf16.mxu0 %v991_v0 }
  0x4b   : > { %757 = vmatprep.subr.bf16.mxu1 %v991_v0 }
  0x4d   : > { %774 = vmatpush3.bf16.msra.mxu0 %v861_v17 }
  0x4e   : > { %758 = vmatpush3.bf16.msra.mxu1 %v855_v11  ;;  %775 = vmatprep.subr.bf16.mxu0 %v991_v0 }
  0x4f   : > { %759 = vmatprep.subr.bf16.mxu1 %v991_v0 }
  0x51   : > { %776 = vmatpush3.bf16.msra.mxu0 %v862_v18 }
  0x52   : > { %760 = vmatpush3.bf16.msra.mxu1 %v856_v12  ;;  %777 = vmatprep.subr.bf16.mxu0 %v991_v0 }
  0x55   : > { %778 = vmatpush3.bf16.msra.mxu0 %v863_v27 }
  0x56   : > { %779 = vmatprep.subr.bf16.mxu0 %v991_v0 }
  0x59   : > { %780 = vmatpush3.bf16.msra.mxu0 %v864_v28 }
  0xfc   : > { %v357_v20 = vpop.f32.mrf.mxu0 }
  0xfd   : > { %v358_v21 = vadd.f32 %v695_v19, %v357_v20 }
  0xfe   : > { %v743_v22 = vpop.f32.mrf.mxu0 }
  0xff   : > { %v363_v23 = vmax.f32 %v358_v21, 0.0 }
 0x100   : > { %v360_v24 = vpop.f32.mrf.mxu0 }
 0x101   : > { %v364_v25 = vpack.c.bf16 %v363_v23, %v363_v23 }
 0x102   : > { %v744_v26 = vpop.f32.mrf.mxu0 }
 0x103   : > { %762 = vmatmul.mubr.bf16.vlgmr.msra.gmra.mxu1 %v364_v25 }
 0x1c3   : > { %v470_v30 = vpop.f32.mrf.mxu1 }
 0x1c4   : > { %v471_v31 = vadd.f32 %v697_v29, %v470_v30 }
 0x1c5   : > { %v763_v32 = vpop.f32.mrf.mxu1 }
 0x1c6   : > { %v476_v33 = vmax.f32 %v471_v31, 0.0 }
 0x1c7   : > { %v473_v34 = vpop.f32.mrf.mxu1 }
 0x1c8   : > { %v477_v35 = vpack.c.bf16 %v476_v33, %v476_v33 }
 0x1c9   : > { %v764_v36 = vpop.f32.mrf.mxu1 }
 0x1ca   : > { %782 = vmatmul.mubr.bf16.vlgmr.msra.gmra.mxu0 %v477_v35 }
 0x28a   : > { %v583_v38 = vpop.f32.mrf.mxu0 }
 0x28b   : > { %v584_v39 = vadd.f32 %v706_v37, %v583_v38 }
 0x28c   : > { %v783_v40 = vpop.f32.mrf.mxu0 }
 0x28d   : > { %589 = vst [vmem:[%s299_s15] sm:$0xff] %v584_v39 }
 0x28e   : > { %v586_v41 = vpop.f32.mrf.mxu0 }
 0x28f   : > { %930 = shalt.err (!%p927_p3)
}
 0x290   : > { %s931_s8 = scalar_lea.hbm %s1168_s19, 128  ;;  %s935_s13 = scalar_lea.hbm %s1216_s7, 256 }
 0x291   : > { %p932_p2 = scmp.ne.s32.totalorder %s1168_s19, %s931_s8  ;;  %p936_p7 = scmp.lt.s32.totalorder %s1168_s19, %s1216_s7 }
 0x292   : > { %p937_p6 = scmp.lt.s32.totalorder %s935_s13, %s931_s8 }
 0x293   : > { %p933_p4 = pnand %p932_p2, %p1072_p5 }
 0x294   : > { %p938_p9 = por %p937_p6, %p936_p7 }
 0x295   : > { %p934_p13 = pneg %p933_p4 }
 0x297   : > { %p939_p10 = pnand %p938_p9, %p934_p13 }
 0x299   : > { %942 = shalt.err (!%p939_p10)
}
 0x29a   : > { %793 = dma.vmem_to_hbm [thread:$0]  (%p1072_p5), %s1170_s16, 128, %s1168_s19, %s591_s20   ;;  %v784_v42 = vpop.f32.mrf.mxu0 }
 0x29b PF: > { %p810_p12 = scmp.ge.s32.totalorder %s985_s27, 2  ;;  %s616_s17 = sand.u32 1, %s973_s24  }
 0x29c   : > { %p1226_p8 = scmp.ne.s32.totalorder %s1219_s12, 0  ;;  %s617_s18 = scalar_lea.sflag [#allocation4], %s616_s17 }
 0x29e   : > { %p803_p11 = pnand %p810_p12, %p1226_p8 }
 0x2a0   : > { %p804_p0 = pneg %p803_p11 }
 0x2a2   : > { %968 = dma.done.wait (%p804_p0), %s617_s18, 128  }
 0x2a3   : > { %970 = vsyncadd (%p804_p0), %s617_s18, 4294967168  ;;  %p19_p1 = scmp.ge.s32.totalorder %s1059_s30, 4   ;;  %s1227_s24 = smov %s977_s25 }
 0x2a4   : > { %s1228_s25 = smov %s981_s26  ;;  %s1229_s26 = smov %s1070_s10 }
 0x2a5   : > { %s1230_s27 = smov %s1059_s30  ;;  %21 = sbr.rel (!%p19_p1) target bundleno = 5 (0x5), region = 92 }
 0x2aa   :  { %622 = vsyncpa [#allocation3], 1 }
 0x2ab   :  { %624 = vsyncpa [#allocation3 + $0x1], 1 }
 0x2ac   :  { %625 = vsyncpa [#allocation6], 1 }
 0x2ad   :  { %626 = vsyncpa [#allocation4], 1 }
 0x2ae   :  { %628 = vsyncpa [#allocation4 + $0x1], 1 }

// kernel: tpu_custom_call.1
= control target key start
LH: loop header
LB: loop body
LE: loop exit
PB: predicated region body
PF: predicated region fallthrough
CT: control target
= control target key end

     0   :  { %12 = vsyncpa [#allocation3], 0  ;;  %s1209_s0 = inlined_call_operand.vmem [shape: f32[16,8], index: 0, kind: input, shape index: {}]   ;;  %s1210_s1 = inlined_call_operand.vmem [shape: bf16[8,128], index: 1, kind: input, shape index: {}]   ;;  %s1211_s2 = inlined_call_operand.vmem [shape: f32[1,128], index: 2, kind: input, shape index: {}]   ;;  %s1212_s3 = inlined_call_operand.hbm [shape: bf16[128,128], index: 3, kind: input, shape index: {}]   ;;  %s1213_s4 = inlined_call_operand.vmem [shape: f32[1,128], index: 4, kind: input, shape index: {}]   ;;  %s1214_s5 = inlined_call_operand.hbm [shape: bf16[128,128], index: 5, kind: input, shape index: {}]   ;;  %s1215_s6 = inlined_call_operand.vmem [shape: f32[1,128], index: 6, kind: input, shape index: {}]   ;;  %s1216_s7 = inlined_call_operand.hbm [shape: f32[16,128], index: 7, kind: output, shape index: {}]  }
   0x1   :  { %13 = vsyncpa [#allocation6], 0 }
   0x2   :  { %14 = vsyncpa [#allocation4], 0 }
   0x3   :  { %16 = vsyncpa [#allocation4 + $0x1], 0  ;;  %s1034_s24 = smov 0   ;;  %s1036_s25 = smov 0  }
   0x4   :  { %s1038_s26 = smov 0   ;;  %s1040_s27 = smov 0  }
   0x5 LB: > { %s1055_s28 = sadd.s32 4294967295, %s985_s27   ;;  %s685_s29 = sadd.s32 4294967294, %s985_s27   ;;  %s985_s27 = sphi %s1040_s27, %s1230_s27   ;;  %s981_s26 = sphi %s1038_s26, %s1229_s26   ;;  %s977_s25 = sphi %s1036_s25, %s1228_s25   ;;  %s973_s24 = sphi %s1034_s24, %s1227_s24  }
   0x6   : > { %s1059_s30 = sadd.s32 1, %s985_s27   ;;  %s181_s8 = sadd.s32 1, %s981_s26 }
   0x7   : > { %s178_s9 = ssub.s32 %s985_s27, %s1059_s30  ;;  %p191_p0 = scmp.ne.s32.totalorder %s981_s26, %s977_s25 }
   0x8   : > { %p179_p1 = scmp.eq.s32.totalorder %s178_s9, 0  ;;  %p192_p2 = scmp.eq.s32.totalorder %s1055_s28, 1 }
   0x9   : > { %p197_p3 = scmp.ne.s32.totalorder %s977_s25, %s973_s24  ;;  %p198_p4 = scmp.eq.s32.totalorder %s685_s29, 1 }
   0xa   : > { %s1070_s10 = scalar_select %p179_p1, %s981_s26, %s181_s8  }
   0xb   : > { %p1072_p5 = por %p192_p2, %p191_p0  ;;  %p1076_p6 = por %p198_p4, %p197_p3 }
   0xc   : > { %p686_p7 = scmp.ge.s32.totalorder %s985_s27, 1  ;;  %p205_p8 = scmp.lt.s32.totalorder %s985_s27, 3 }
   0xd   : > { %s1219_s12 = scalar_select %p1076_p6, 1, 0 }
   0xe   : > { %p1217_p9 = scmp.eq.s32.totalorder %s1055_s28, 0  ;;  %p1083_p10 = pnand %p686_p7, %p205_p8 }
   0xf   : > { %s987_s14 = smov [#allocation2]   ;;  %s988_s17 = smov [#allocation5]  }
  0x10   : > { %s223_s15 = sshll.u32 %s987_s14, 4  ;;  %p795_p11 = pneg %p1083_p10  ;;  %s224_s15 = int_to_ptr.vmem [resolvable:$true] %s223_s15 }
  0x11   : > { %s239_s18 = sshll.u32 %s988_s17, 4  ;;  %s876_s19 = scalar_lea.vmem %s224_s15, 1024  ;;  %s240_s18 = int_to_ptr.vmem [resolvable:$true] %s239_s18 }
  0x12   : > { %p1091_p12 = pnand %p1217_p9, %p795_p11  ;;  %p877_p0 = scmp.ne.s32.totalorder %s224_s15, %s876_s19 }
  0x13   : > { %p884_p3 = scmp.lt.s32.totalorder %s224_s15, %s224_s15  ;;  %p885_p4 = scmp.lt.s32.totalorder %s876_s19, %s876_s19 }
  0x14   : > { %p867_p13 = pneg %p1091_p12 }
  0x15   : > { %p886_p7 = por %p885_p4, %p884_p3 }
  0x16   : > { %p879_p1 = pnand %p877_p0, %p867_p13 }
  0x18   : > { %p880_p2 = pneg %p879_p1 }
  0x1a   : > { %p887_p8 = pnand %p886_p7, %p880_p2 }
  0x1c   : > { %890 = shalt.err (!%p887_p8)
}
  0x1d   : > { %s989_s20 = smov 64   ;;  %s990_s21 = smov 4  }
  0x1e   : > { %798 = dma.hbm_to_vmem [thread:$0]  (!%p1091_p12), %s1212_s3, 1024, %s224_s15, [#allocation3], %s989_s20, %s989_s20, %s990_s21  }
  0x1f   : > { %s902_s29 = scalar_lea.vmem %s240_s18, 1024  ;;  %p910_p9 = scmp.lt.s32.totalorder %s240_s18, %s240_s18 }
  0x20   : > { %p903_p11 = scmp.ne.s32.totalorder %s240_s18, %s902_s29  ;;  %p911_p6 = scmp.lt.s32.totalorder %s902_s29, %s902_s29 }
  0x22   : > { %p905_p0 = pnand %p903_p11, %p867_p13  ;;  %p912_p3 = por %p911_p6, %p910_p9 }
  0x24   : > { %p906_p1 = pneg %p905_p0 }
  0x26   : > { %p913_p2 = pnand %p912_p3, %p906_p1 }
  0x28   : > { %916 = shalt.err (!%p913_p2)
}
  0x29   : > { %801 = dma.hbm_to_vmem [thread:$0]  (!%p1091_p12), %s1214_s5, 1024, %s240_s18, [#allocation6], %s989_s20, %s989_s20, %s990_s21  }
  0x2a   : > { %265 = sbr.rel (%p1083_p10) target bundleno = 667 (0x29b), region = 48  ;;  %p1222_p4 = scmp.eq.s32.totalorder (!%p1083_p10), %s1055_s28, 0 }
  0x2f   : > { %960 = dma.done.wait (%p1222_p4), [#allocation3], 1024   ;;  %p1223_p13 = pmov %p1222_p4 }
  0x30   : > { %p1224_p7 = pmov %p1222_p4 }
  0x31   : > { %962 = vsyncadd (%p1223_p13), [#allocation3], 4294966272 }
  0x32   : > { %964 = dma.done.wait (%p1224_p7), [#allocation6], 1024   ;;  %p1225_p6 = pmov %p1222_p4 }
  0x33   : > { %p300_p9 = scmp.lt.s32.totalorder %s1055_s28, 1  ;;  %v991_v0 = vmov 0.0   ;;  %vm992_vm0 = vmmov 0   ;;  %vm319_vm1 = vcmask 1043456   ;;  %v307_v1 = vld [vmem:[%s1210_s1] sm:$0xf] }
  0x34   : > { %966 = vsyncadd (%p1225_p6), [#allocation6], 4294966272  ;;  %739 = vmatprep.subr.bf16.mxu0 %v991_v0  ;;  %741 = vmatprep.mubr.msk.bf16.mxu0 %vm992_vm0, %v991_v0  ;;  %v321_v3 = vsel %vm319_vm1, %v307_v1, 0  ;;  %v849_v5 = vld [vmem:[#allocation2 + $0x38] sm:$0xff]   ;;  %vm315_vm2 = vcmask 64512   ;;  %v850_v6 = vld [vmem:[#allocation2 + $0x30] sm:$0xff]  }
  0x35   : > { %s301_s13 = scalar_select %p300_p9, %s1055_s28, 1  ;;  %745 = vmatprep.subr.bf16.mxu1 %v991_v0  ;;  %761 = vmatprep.mubr.msk.bf16.mxu1 %vm992_vm0, %v991_v0  ;;  %v851_v7 = vld [vmem:[#allocation2 + $0x28] sm:$0xff]   ;;  %v852_v8 = vld [vmem:[#allocation2 + $0x20] sm:$0xff]   ;;  %v853_v9 = vld [vmem:[#allocation2 + $0x18] sm:$0xff]  }
  0x36   : > { %740 = vmatpush3.bf16.msra.mxu0 %v321_v3  ;;  %746 = vmatpush3.bf16.msra.mxu1 %v849_v5  ;;  %v854_v10 = vld [vmem:[#allocation2 + $0x10] sm:$0xff]   ;;  %v855_v11 = vld [vmem:[#allocation2 + $0x8] sm:$0xff]   ;;  %v856_v12 = vld [vmem:[#allocation2] sm:$0xff]   ;;  %s297_s29 = sand.u32 1, %s977_s25  }
  0x37   : > { %s694_s14 = sshll.u32 %s301_s13, 3  ;;  %765 = vmatprep.subr.bf16.mxu0 %v991_v0  ;;  %747 = vmatprep.subr.bf16.mxu1 %v991_v0  ;;  %v857_v13 = vld [vmem:[#allocation5 + $0x38] sm:$0xff]   ;;  %v858_v14 = vld [vmem:[#allocation5 + $0x30] sm:$0xff]   ;;  %v859_v15 = vld [vmem:[#allocation5 + $0x28] sm:$0xff]   ;;  %s693_s8 = sshll.u32 %s297_s29, 3 }
  0x38   : > { %s303_s17 = scalar_lea.vmem %s1209_s0, %s694_s14  ;;  %v860_v16 = vld [vmem:[#allocation5 + $0x20] sm:$0xff]   ;;  %v861_v17 = vld [vmem:[#allocation5 + $0x18] sm:$0xff]   ;;  %v862_v18 = vld [vmem:[#allocation5 + $0x10] sm:$0xff]   ;;  %s716_s14 = sshll.u32 %s1055_s28, 7 }
  0x39   : > { %v305_v2 = vld [vmem:[%s303_s17] sm:$0xff]  ;;  %v863_v27 = vld [vmem:[#allocation5 + $0x8] sm:$0xff]   ;;  %s299_s15 = scalar_lea.vmem [#allocation7], %s693_s8  ;;  %s1168_s19 = scalar_lea.hbm %s1216_s7, %s716_s14 }
  0x3a   : > { %v306_v4 = vpack.c.bf16 %v305_v2, %v305_v2  ;;  %748 = vmatpush3.bf16.msra.mxu1 %v850_v6  ;;  %v695_v19 = vld [vmem:[%s1211_s2] ss:$0 sm:$0xff]  ;;  %s604_s16 = sshll.u32 %s299_s15, 4  ;;  %s591_s20 = scalar_lea.sflag [#allocation4], %s297_s29  ;;  %s1170_s16 = int_to_ptr.vmem [resolvable:$true] %s604_s16 }
  0x3b   : > { %749 = vmatprep.subr.bf16.mxu1 %v991_v0  ;;  %v864_v28 = vld [vmem:[#allocation5] sm:$0xff]   ;;  %s917_s21 = scalar_lea.vmem %s1170_s16, 128  ;;  %s993_s28 = smov [#allocation7]  }
  0x3c   : > { %742 = vmatmul.mubr.msk.bf16.vlgmr.msra.gmra.mxu0 %vm315_vm2, %v306_v4  ;;  %v697_v29 = vld [vmem:[%s1213_s4] ss:$0 sm:$0xff]  ;;  %p918_p10 = scmp.ne.s32.totalorder %s1170_s16, %s917_s21  ;;  %s921_s22 = sshll.u32 %s993_s28, 4  ;;  %s922_s22 = int_to_ptr.vmem [resolvable:$false] %s921_s22 }
  0x3d   : > { %781 = vmatprep.mubr.msk.bf16.mxu0 %vm992_vm0, %v991_v0  ;;  %766 = vmatpush3.bf16.msra.mxu0 %v857_v13  ;;  %v706_v37 = vld [vmem:[%s1215_s6] ss:$0 sm:$0xff]  ;;  %s923_s23 = scalar_lea.vmem %s922_s22, 256  ;;  %p924_p11 = scmp.lt.s32.totalorder %s1170_s16, %s922_s22 }
  0x3e   : > { %750 = vmatpush3.bf16.msra.mxu1 %v851_v7  ;;  %767 = vmatprep.subr.bf16.mxu0 %v991_v0  ;;  %p919_p12 = pnand %p918_p10, %p1072_p5  ;;  %p925_p0 = scmp.lt.s32.totalorder %s923_s23, %s917_s21 }
  0x3f   : > { %751 = vmatprep.subr.bf16.mxu1 %v991_v0 }
  0x40   : > { %p920_p8 = pneg %p919_p12  ;;  %p926_p1 = por %p925_p0, %p924_p11 }
  0x41   : > { %768 = vmatpush3.bf16.msra.mxu0 %v858_v14 }
  0x42   : > { %752 = vmatpush3.bf16.msra.mxu1 %v852_v8  ;;  %769 = vmatprep.subr.bf16.mxu0 %v991_v0  ;;  %p927_p3 = pnand %p926_p1, %p920_p8 }
  0x43   : > { %753 = vmatprep.subr.bf16.mxu1 %v991_v0 }
  0x45   : > { %770 = vmatpush3.bf16.msra.mxu0 %v859_v15 }
  0x46   : > { %754 = vmatpush3.bf16.msra.mxu1 %v853_v9  ;;  %771 = vmatprep.subr.bf16.mxu0 %v991_v0 }
  0x47   : > { %755 = vmatprep.subr.bf16.mxu1 %v991_v0 }
  0x49   : > { %772 = vmatpush3.bf16.msra.mxu0 %v860_v16 }
  0x4a   : > { %756 = vmatpush3.bf16.msra.mxu1 %v854_v10  ;;  %773 = vmatprep.subr.bf16.mxu0 %v991_v0 }
  0x4b   : > { %757 = vmatprep.subr.bf16.mxu1 %v991_v0 }
  0x4d   : > { %774 = vmatpush3.bf16.msra.mxu0 %v861_v17 }
  0x4e   : > { %758 = vmatpush3.bf16.msra.mxu1 %v855_v11  ;;  %775 = vmatprep.subr.bf16.mxu0 %v991_v0 }
  0x4f   : > { %759 = vmatprep.subr.bf16.mxu1 %v991_v0 }
  0x51   : > { %776 = vmatpush3.bf16.msra.mxu0 %v862_v18 }
  0x52   : > { %760 = vmatpush3.bf16.msra.mxu1 %v856_v12  ;;  %777 = vmatprep.subr.bf16.mxu0 %v991_v0 }
  0x55   : > { %778 = vmatpush3.bf16.msra.mxu0 %v863_v27 }
  0x56   : > { %779 = vmatprep.subr.bf16.mxu0 %v991_v0 }
  0x59   : > { %780 = vmatpush3.bf16.msra.mxu0 %v864_v28 }
  0xfc   : > { %v357_v20 = vpop.f32.mrf.mxu0 }
  0xfd   : > { %v358_v21 = vadd.f32 %v695_v19, %v357_v20 }
  0xfe   : > { %v743_v22 = vpop.f32.mrf.mxu0 }
  0xff   : > { %v363_v23 = vmax.f32 %v358_v21, 0.0 }
 0x100   : > { %v360_v24 = vpop.f32.mrf.mxu0 }
 0x101   : > { %v364_v25 = vpack.c.bf16 %v363_v23, %v363_v23 }
 0x102   : > { %v744_v26 = vpop.f32.mrf.mxu0 }
 0x103   : > { %762 = vmatmul.mubr.bf16.vlgmr.msra.gmra.mxu1 %v364_v25 }
 0x1c3   : > { %v470_v30 = vpop.f32.mrf.mxu1 }
 0x1c4   : > { %v471_v31 = vadd.f32 %v697_v29, %v470_v30 }
 0x1c5   : > { %v763_v32 = vpop.f32.mrf.mxu1 }
 0x1c6   : > { %v476_v33 = vmax.f32 %v471_v31, 0.0 }
 0x1c7   : > { %v473_v34 = vpop.f32.mrf.mxu1 }
 0x1c8   : > { %v477_v35 = vpack.c.bf16 %v476_v33, %v476_v33 }
 0x1c9   : > { %v764_v36 = vpop.f32.mrf.mxu1 }
 0x1ca   : > { %782 = vmatmul.mubr.bf16.vlgmr.msra.gmra.mxu0 %v477_v35 }
 0x28a   : > { %v583_v38 = vpop.f32.mrf.mxu0 }
 0x28b   : > { %v584_v39 = vadd.f32 %v706_v37, %v583_v38 }
 0x28c   : > { %v783_v40 = vpop.f32.mrf.mxu0 }
 0x28d   : > { %589 = vst [vmem:[%s299_s15] sm:$0xff] %v584_v39 }
 0x28e   : > { %v586_v41 = vpop.f32.mrf.mxu0 }
 0x28f   : > { %930 = shalt.err (!%p927_p3)
}
 0x290   : > { %s931_s8 = scalar_lea.hbm %s1168_s19, 128  ;;  %s935_s13 = scalar_lea.hbm %s1216_s7, 256 }
 0x291   : > { %p932_p2 = scmp.ne.s32.totalorder %s1168_s19, %s931_s8  ;;  %p936_p7 = scmp.lt.s32.totalorder %s1168_s19, %s1216_s7 }
 0x292   : > { %p937_p6 = scmp.lt.s32.totalorder %s935_s13, %s931_s8 }
 0x293   : > { %p933_p4 = pnand %p932_p2, %p1072_p5 }
 0x294   : > { %p938_p9 = por %p937_p6, %p936_p7 }
 0x295   : > { %p934_p13 = pneg %p933_p4 }
 0x297   : > { %p939_p10 = pnand %p938_p9, %p934_p13 }
 0x299   : > { %942 = shalt.err (!%p939_p10)
}
 0x29a   : > { %793 = dma.vmem_to_hbm [thread:$0]  (%p1072_p5), %s1170_s16, 128, %s1168_s19, %s591_s20   ;;  %v784_v42 = vpop.f32.mrf.mxu0 }
 0x29b PF: > { %p810_p12 = scmp.ge.s32.totalorder %s985_s27, 2  ;;  %s616_s17 = sand.u32 1, %s973_s24  }
 0x29c   : > { %p1226_p8 = scmp.ne.s32.totalorder %s1219_s12, 0  ;;  %s617_s18 = scalar_lea.sflag [#allocation4], %s616_s17 }
 0x29e   : > { %p803_p11 = pnand %p810_p12, %p1226_p8 }
 0x2a0   : > { %p804_p0 = pneg %p803_p11 }
 0x2a2   : > { %968 = dma.done.wait (%p804_p0), %s617_s18, 128  }
 0x2a3   : > { %970 = vsyncadd (%p804_p0), %s617_s18, 4294967168  ;;  %p19_p1 = scmp.ge.s32.totalorder %s1059_s30, 4   ;;  %s1227_s24 = smov %s977_s25 }
 0x2a4   : > { %s1228_s25 = smov %s981_s26  ;;  %s1229_s26 = smov %s1070_s10 }
 0x2a5   : > { %s1230_s27 = smov %s1059_s30  ;;  %21 = sbr.rel (!%p19_p1) target bundleno = 5 (0x5), region = 92 }
 0x2aa   :  { %622 = vsyncpa [#allocation3], 1 }
 0x2ab   :  { %624 = vsyncpa [#allocation3 + $0x1], 1 }
 0x2ac   :  { %625 = vsyncpa [#allocation6], 1 }
 0x2ad   :  { %626 = vsyncpa [#allocation4], 1 }
 0x2ae   :  { %628 = vsyncpa [#allocation4 + $0x1], 1 }

</bundles_post_ra>
